<compile_context>
chip_gen: v7x
topology: tpu7x:2x2x1
jax: 0.10.0
libtpu: 0.0.40
codegen_flags: <defaults>
</compile_context>

<pallas_src>
import jax
import jax.numpy as jnp
from jax.experimental import pallas as pl
from jax.experimental.pallas import tpu as pltpu

_MIB = 1024 * 1024


def _round_up(x, m):
    return ((x + m - 1) // m) * m


def _cdiv(a, b):
    return (a + b - 1) // b


# ---------------------------------------------------------------------------
# Kernels
# ---------------------------------------------------------------------------
def _linear_lrelu_kernel(x_ref, w_ref, b_ref, o_ref):
    """Fused full-K step: MXU matmul (f32 acc) -> bias add -> LeakyReLU(0.2)."""
    x = x_ref[...]
    if x.dtype != w_ref.dtype:
        x = x.astype(w_ref.dtype)  # per-tile cast on the VPU; avoids an XLA pre-pass over x
    acc = jnp.dot(x, w_ref[...], preferred_element_type=jnp.float32)
    acc = acc + b_ref[...]
    o_ref[...] = jnp.maximum(acc, 0.2 * acc).astype(o_ref.dtype)


def _linear_lrelu_kernel_ktiled(x_ref, w_ref, b_ref, o_ref, acc_ref):
    """K-tiled step (grid axis 2 = K, 'arbitrary'); bounds VMEM for huge input_dim."""
    k = pl.program_id(2)

    @pl.when(k == 0)
    def _():
        acc_ref[...] = jnp.zeros_like(acc_ref)

    x = x_ref[...]
    if x.dtype != w_ref.dtype:
        x = x.astype(w_ref.dtype)
    acc_ref[...] += jnp.dot(x, w_ref[...], preferred_element_type=jnp.float32)

    @pl.when(k == pl.num_programs(2) - 1)
    def _():
        acc = acc_ref[...] + b_ref[...]
        o_ref[...] = jnp.maximum(acc, 0.2 * acc).astype(o_ref.dtype)


# ---------------------------------------------------------------------------
# Parameter prep (one-time, at module init — NOT per forward call)
# ---------------------------------------------------------------------------
def prepare_linear_block_params(weight, bias, compute_dtype=jnp.bfloat16):
    """weight: (output_dim, input_dim) [nn.Linear layout]; bias: (output_dim,).

    Returns W^T (input_dim, output_dim) in the matmul compute dtype and the bias
    as a (1, output_dim) f32 row.  No padding: ragged trailing tiles are masked
    by Pallas, so the forward path needs no per-call pad copy or output slice.
    compute_dtype=bf16 is an intentional, documented precision knob (pass
    jnp.float32 for a bit-tight match to the f32 PyTorch Linear).
    """
    w_t = jnp.asarray(weight).T.astype(compute_dtype)
    b2d = jnp.asarray(bias).reshape(1, -1).astype(jnp.float32)
    return w_t, b2d


# ---------------------------------------------------------------------------
# Tile / VMEM selection helpers
# ---------------------------------------------------------------------------
def _vmem_budget_bytes():
    try:
        cap = pltpu.get_tpu_info().vmem_capacity_bytes
    except Exception:
        cap = 64 * _MIB  # conservative (v7x per-core VMEM)
    return int(cap) * 5 // 8  # leave headroom for Mosaic internal scratch


def _step_bytes(block_b, tile_n, k_block, x_sz, c_sz, o_sz, explicit_acc):
    buf = 2 * (block_b * k_block * x_sz       # x tile   (double-buffered)
               + k_block * tile_n * c_sz      # W^T tile (double-buffered)
               + 8 * tile_n * 4               # bias tile (sublane-padded)
               + block_b * tile_n * o_sz)     # output tile
    buf += block_b * tile_n * 4               # implicit f32 matmul result buffer
    if explicit_acc:
        buf += block_b * tile_n * 4           # explicit K-tiling accumulator scratch
    return buf


# ---------------------------------------------------------------------------
# Forward
# ---------------------------------------------------------------------------
def linear_block_apply(x, w_t, b2d, *, out_dtype=None):
    """x: (B, input_dim); w_t, b2d from prepare_linear_block_params().

    out_dtype defaults to x.dtype; pass jnp.bfloat16 on bandwidth-bound parts
    (e.g. v5e) if the consumer tolerates a bf16 output.
    """
    B, K = x.shape
    Kw, N = w_t.shape
    assert Kw == K and b2d.shape == (1, N)
    out_dtype = out_dtype if out_dtype is not None else x.dtype

    x_sz = jnp.dtype(x.dtype).itemsize
    c_sz = jnp.dtype(w_t.dtype).itemsize
    o_sz = jnp.dtype(out_dtype).itemsize

    budget = _vmem_budget_bytes()
    big_vmem = budget >= 64 * _MIB            # v5e/v6e (128 MiB) vs v7x (64 MiB)
    tgt_b = 512 if big_vmem else 256
    tgt_n = 512 if big_vmem else 256

    def fits(bb, tn, kb, acc=False):
        return _step_bytes(bb, tn, kb, x_sz, c_sz, o_sz, acc) <= (budget * 85) // 100

    # ---- batch tile: track B to minimise ragged-block waste --------------------
    if B <= tgt_b:
        block_b = B                           # single block == full dim (exempt from 8-rule)
    else:
        nb = _cdiv(B, tgt_b)
        block_b = _round_up(_cdiv(B, nb), 8)
    nb = _cdiv(B, block_b)

    # ---- N / K tile selection ---------------------------------------------------
    tile_k = K
    k_tiled = False
    if fits(block_b, N, K):
        tile_n = N                            # weight + bias fully VMEM-resident
    else:
        tile_n = (min(N, tgt_n) // 128) * 128
        if tile_n == 0:
            tile_n = N                        # N < 128: only the full (exempt) dim is valid
        else:
            while tile_n > 128 and not fits(block_b, tile_n, K):
                tile_n -= 128
        if not fits(block_b, tile_n, K):
            # Full-K tiles do not fit (very large input_dim).  Tile K with an f32
            # accumulator when K is 128-aligned so every K block is exact (no
            # garbage contamination of the reduction).
            if K % 128 == 0:
                best = 0
                cand = 128
                while cand <= K:
                    if K % cand == 0 and fits(block_b, tile_n, cand, acc=True):
                        best = cand
                    cand += 128
                if best:
                    tile_k = best
                    k_tiled = True
            # TODO(synk): unaligned huge input_dim would need an explicit K pad;
            # fall back to full-K with a raised VMEM limit (may spill on v7x).
    nn = _cdiv(N, tile_n)

    # ---- megacore: guarantee >=2 steps on a parallel axis when worthwhile ------
    if nb * nn == 1 and B >= 16:
        block_b = _round_up(_cdiv(B, 2), 8)
        nb = _cdiv(B, block_b)

    # ---- loop order: the larger operand is the one read from HBM once ----------
    x_total = B * K * x_sz
    w_total = K * N * c_sz
    j_outer = (w_total + nn * x_total) <= (x_total + nb * w_total)

    if not k_tiled:
        if j_outer:   # W tile read once, x streamed nn times
            grid = (nn, nb)
            x_spec = pl.BlockSpec((block_b, K), lambda j, i: (i, 0))
            w_spec = pl.BlockSpec((K, tile_n), lambda j, i: (0, j))
            b_spec = pl.BlockSpec((1, tile_n), lambda j, i: (0, j))
            o_spec = pl.BlockSpec((block_b, tile_n), lambda j, i: (i, j))
        else:         # x read once, W streamed nb times
            grid = (nb, nn)
            x_spec = pl.BlockSpec((block_b, K), lambda i, j: (i, 0))
            w_spec = pl.BlockSpec((K, tile_n), lambda i, j: (0, j))
            b_spec = pl.BlockSpec((1, tile_n), lambda i, j: (0, j))
            o_spec = pl.BlockSpec((block_b, tile_n), lambda i, j: (i, j))
        kernel = _linear_lrelu_kernel
        scratch = []
        dims = ("parallel", "parallel")
    else:
        nk = K // tile_k
        if j_outer:
            grid = (nn, nb, nk)
            x_spec = pl.BlockSpec((block_b, tile_k), lambda j, i, k: (i, k))
            w_spec = pl.BlockSpec((tile_k, tile_n), lambda j, i, k: (k, j))
            b_spec = pl.BlockSpec((1, tile_n), lambda j, i, k: (0, j))
            o_spec = pl.BlockSpec((block_b, tile_n), lambda j, i, k: (i, j))
        else:
            grid = (nb, nn, nk)
            x_spec = pl.BlockSpec((block_b, tile_k), lambda i, j, k: (i, k))
            w_spec = pl.BlockSpec((tile_k, tile_n), lambda i, j, k: (k, j))
            b_spec = pl.BlockSpec((1, tile_n), lambda i, j, k: (0, j))
            o_spec = pl.BlockSpec((block_b, tile_n), lambda i, j, k: (i, j))
        kernel = _linear_lrelu_kernel_ktiled
        scratch = [pltpu.VMEM((block_b, tile_n), jnp.float32)]
        dims = ("parallel", "parallel", "arbitrary")

    step_bytes = _step_bytes(block_b, tile_n, tile_k, x_sz, c_sz, o_sz, k_tiled)
    vmem_limit = int(min(budget, max(step_bytes + step_bytes // 2 + 4 * _MIB, 24 * _MIB)))

    return pl.pallas_call(
        kernel,
        out_shape=jax.ShapeDtypeStruct((B, N), out_dtype),
        grid_spec=pltpu.PrefetchScalarGridSpec(
            num_scalar_prefetch=0,
            grid=grid,
            in_specs=[x_spec, w_spec, b_spec],
            out_specs=o_spec,
            scratch_shapes=scratch),
        compiler_params=pltpu.CompilerParams(
            dimension_semantics=dims,
            vmem_limit_bytes=vmem_limit),
    )(x, w_t, b2d)


if __name__ == "__main__":
    key = jax.random.PRNGKey(0)
    k_x, k_w, k_b = jax.random.split(key, 3)

    B, input_dim, output_dim = 8, 32, 64

    # Deterministic synthetic parameters (nn.Linear(input_dim, output_dim, bias=True))
    bound = 1.0 / (input_dim ** 0.5)
    weight = jax.random.uniform(k_w, (output_dim, input_dim),
                                minval=-bound, maxval=bound, dtype=jnp.float32)
    bias = jax.random.uniform(k_b, (output_dim,),
                              minval=-bound, maxval=bound, dtype=jnp.float32)
    x = jax.random.normal(k_x, (B, input_dim), dtype=jnp.float32)

    # Reference (plain JAX): leaky_relu(x @ W^T + b, 0.2)
    ref = x @ weight.T + bias
    ref = jnp.where(ref >= 0.0, ref, 0.2 * ref)

    # 1) f32-compute path: tight check (same math as the PyTorch module).
    w_t32, b32 = prepare_linear_block_params(weight, bias, compute_dtype=jnp.float32)
    out32 = jax.block_until_ready(linear_block_apply(x, w_t32, b32))
    assert out32.shape == (B, output_dim)
    assert jnp.allclose(out32, ref, atol=1e-5, rtol=1e-5)

    # 2) Default fast path: bf16 operands on the MXU with f32 accumulation.
    w_t, b2d = prepare_linear_block_params(weight, bias)   # bf16 by default
    out = jax.block_until_ready(linear_block_apply(x, w_t, b2d))
    assert out.shape == (B, output_dim)
    assert jnp.allclose(out, ref, atol=3e-2, rtol=3e-2)

    print("KERNEL_OK")
</pallas_src>

<mosaic_0001>
module attributes {stable_mosaic.version = 11 : i64} {
  func.func @_linear_lrelu_kernel(%arg0: i32, %arg1: i32, %arg2: memref<8x32xf32, #tpu.memory_space<vmem>>, %arg3: memref<32x64xf32, #tpu.memory_space<vmem>>, %arg4: memref<1x64xf32, #tpu.memory_space<vmem>>, %arg5: memref<8x64xf32, #tpu.memory_space<vmem>>) attributes {dimension_semantics = [#tpu.dimension_semantics<parallel>, #tpu.dimension_semantics<parallel>], iteration_bounds = array<i64: 1, 1>, scalar_prefetch = 0 : i64, scratch_operands = 0 : i64, tpu.core_type = #tpu.core_type<tc>, window_params = [{transform_indices = @transform_0, window_bounds = array<i64: 8, 32>}, {transform_indices = @transform_1, window_bounds = array<i64: 32, 64>}, {transform_indices = @transform_2, window_bounds = array<i64: 1, 64>}, {transform_indices = @transform_3, window_bounds = array<i64: 8, 64>}]} {
    %c0 = arith.constant 0 : index
    %c0_0 = arith.constant 0 : index
    %0 = vector.load %arg2[%c0, %c0_0] : memref<8x32xf32, #tpu.memory_space<vmem>>, vector<8x32xf32>
    %c0_1 = arith.constant 0 : index
    %c0_2 = arith.constant 0 : index
    %1 = vector.load %arg3[%c0_1, %c0_2] : memref<32x64xf32, #tpu.memory_space<vmem>>, vector<32x64xf32>
    %cst = arith.constant dense<0.000000e+00> : vector<8x64xf32>
    %2 = tpu.matmul %0, %1, %cst {dimension_numbers = #tpu.dot_dimension_numbers<[1], [0], [0], [1], [0, 0, 1, 1], [], []>} : vector<8x32xf32>, vector<32x64xf32>, vector<8x64xf32> -> vector<8x64xf32>
    %c0_3 = arith.constant 0 : index
    %c0_4 = arith.constant 0 : index
    %3 = vector.load %arg4[%c0_3, %c0_4] : memref<1x64xf32, #tpu.memory_space<vmem>>, vector<1x64xf32>
    %4 = vector.broadcast %3 : vector<1x64xf32> to vector<8x64xf32>
    %5 = arith.addf %2, %4 : vector<8x64xf32>
    %cst_5 = arith.constant 2.000000e-01 : f32
    %6 = vector.broadcast %cst_5 : f32 to vector<8x64xf32>
    %7 = arith.mulf %6, %5 : vector<8x64xf32>
    %8 = arith.maximumf %5, %7 : vector<8x64xf32>
    %c0_6 = arith.constant 0 : index
    %c0_7 = arith.constant 0 : index
    %9 = vector.load %arg5[%c0_6, %c0_7] : memref<8x64xf32, #tpu.memory_space<vmem>>, vector<8x64xf32>
    tpu.vector_store %arg5[%c0_6, %c0_7], %8 {strides = array<i32>} : memref<8x64xf32, #tpu.memory_space<vmem>>, vector<8x64xf32>,
    return
  }
  func.func @transform_0(%arg0: i32, %arg1: i32) -> (i32, i32) {
    %c0_i32 = arith.constant 0 : i32
    %c0_i32_0 = arith.constant 0 : i32
    return %arg1, %c0_i32 : i32, i32
  }
  func.func @transform_1(%arg0: i32, %arg1: i32) -> (i32, i32) {
    %c0_i32 = arith.constant 0 : i32
    %c0_i32_0 = arith.constant 0 : i32
    return %c0_i32, %arg0 : i32, i32
  }
  func.func @transform_2(%arg0: i32, %arg1: i32) -> (i32, i32) {
    %c0_i32 = arith.constant 0 : i32
    %c0_i32_0 = arith.constant 0 : i32
    return %c0_i32, %arg0 : i32, i32
  }
  func.func @transform_3(%arg0: i32, %arg1: i32) -> (i32, i32) {
    %c0_i32 = arith.constant 0 : i32
    return %arg1, %arg0 : i32, i32
  }
}

</mosaic_0001>

<bundles_post_ra>
// kernel: tpu_custom_call.1
= control target key start
LH: loop header
LB: loop body
LE: loop exit
PB: predicated region body
PF: predicated region fallthrough
CT: control target
= control target key end

     0   :  { %8 = vsyncpa [#allocation3], 0  ;;  %s325_s0 = inlined_call_operand.hbm [shape: f32[8,32], index: 0, kind: input, shape index: {}]   ;;  %s326_s1 = inlined_call_operand.hbm [shape: f32[32,64], index: 1, kind: input, shape index: {}]   ;;  %s327_s2 = inlined_call_operand.vmem [shape: f32[1,64], index: 2, kind: input, shape index: {}]   ;;  %s328_s3 = inlined_call_operand.hbm [shape: f32[8,64], index: 3, kind: output, shape index: {}]  }
   0x1   :  { %9 = vsyncpa [#allocation6], 0 }
   0x2   :  { %10 = vsyncpa [#allocation4], 0  ;;  %s251_s12 = smov [#allocation2]   ;;  %s252_s14 = smov [#allocation5]  }
   0x3   :  { %s17_s13 = sshll.u32 %s251_s12, 4  ;;  %s26_s15 = sshll.u32 %s252_s14, 4  ;;  %s18_s13 = int_to_ptr.vmem [resolvable:$true] %s17_s13  ;;  %s279_s15 = int_to_ptr.vmem [resolvable:$true] %s26_s15 }
   0x4   :  { %s179_s18 = scalar_lea.hbm %s325_s0, 128 }
   0x5   :  { %p180_p0 = scmp.ne.s32.totalorder %s325_s0, %s179_s18  ;;  %p183_p1 = scmp.lt.u32.totalorder %s179_s18, %s325_s0 }
   0x7   :  { %p185_p2 = pnand %p183_p1, %p180_p0 }
   0x9   :  { %188 = shalt.err (!%p185_p2)
}
   0xa   :  { %s189_s23 = scalar_lea.vmem %s18_s13, 128  ;;  %p194_p4 = scmp.lt.s32.totalorder %s18_s13, %s18_s13 }
   0xb   :  { %p190_p3 = scmp.ne.s32.totalorder %s18_s13, %s189_s23  ;;  %p195_p5 = scmp.lt.s32.totalorder %s189_s23, %s189_s23 }
   0xd   :  { %p196_p6 = por %p195_p5, %p194_p4 }
   0xf   :  { %p197_p7 = pnand %p196_p6, %p190_p3 }
  0x11   :  { %200 = shalt.err (!%p197_p7)
}
  0x12   :  { %20 = dma.hbm_to_vmem [thread:$0]  %s325_s0, 128, %s18_s13, [#allocation3]  }
  0x13   :  { %s201_s28 = scalar_lea.hbm %s326_s1, 512 }
  0x14   :  { %p202_p8 = scmp.ne.s32.totalorder %s326_s1, %s201_s28  ;;  %p205_p9 = scmp.lt.u32.totalorder %s201_s28, %s326_s1 }
  0x16   :  { %p207_p10 = pnand %p205_p9, %p202_p8 }
  0x18   :  { %210 = shalt.err (!%p207_p10)
}
  0x19   :  { %s211_s6 = scalar_lea.vmem %s279_s15, 512  ;;  %p216_p12 = scmp.lt.s32.totalorder %s279_s15, %s279_s15 }
  0x1a   :  { %p212_p11 = scmp.ne.s32.totalorder %s279_s15, %s211_s6  ;;  %p217_p13 = scmp.lt.s32.totalorder %s211_s6, %s211_s6 }
  0x1c   :  { %p218_p0 = por %p217_p13, %p216_p12 }
  0x1e   :  { %p219_p1 = pnand %p218_p0, %p212_p11 }
  0x20   :  { %222 = shalt.err (!%p219_p1)
}
  0x21   :  { %s253_s0 = smov 128   ;;  %s254_s7 = smov 8  }
  0x22   :  { %32 = dma.hbm_to_vmem [thread:$0]  %s326_s1, 512, %s279_s15, [#allocation6], %s253_s0, %s253_s0, %s254_s7  }
  0x23   :  { %245 = dma.done.wait [#allocation3], 128  }
  0x24   :  { %246 = vsyncadd [#allocation3], 4294967168 }
  0x25   :  { %247 = dma.done.wait [#allocation6], 512  }
  0x26   :  { %248 = vsyncadd [#allocation6], 4294966784  ;;  %v255_v0 = vmov 0.0|0.0   ;;  %vm256_vm0 = vmmov 0   ;;  %v257_v1 = vmov 0.0   ;;  %v42_v2 = vld [vmem:[#allocation5] sm:$0xff] }
  0x27   :  { %165 = vmatprep.subr.bf16.mxu0 %v255_v0  ;;  %162 = vmatprep.mubr.msk.f32.mxu0 %vm256_vm0, %v257_v1  ;;  %v43_v3 = vld [vmem:[#allocation5 + $0x8] sm:$0xff]  ;;  %v44_v4 = vld [vmem:[#allocation5 + $0x10] sm:$0xff]  ;;  %v45_v6 = vld [vmem:[#allocation5 + $0x18] sm:$0xff]  ;;  %vm53_vm1 = vcmask 261120   ;;  %s258_s11 = smov [#allocation7]   ;;  %vm129_vm2 = vcmask 523264  }
  0x28   :  { %v166_v5 = vpack.c.bf16 %v43_v3, %v42_v2  ;;  %v169_v7 = vpack.c.bf16 %v45_v6, %v44_v4  ;;  %v41_v8 = vld [vmem:[#allocation2] sm:$0xff]  ;;  %s137_s12 = sshll.u32 %s258_s11, 4  ;;  %s138_s12 = int_to_ptr.vmem [resolvable:$true] %s137_s12 }
  0x29   :  { %v147_v9 = vld [vmem:[%s327_s2] ss:$0 sm:$0xff]  ;;  %s223_s13 = scalar_lea.vmem %s138_s12, 128  ;;  %p228_p3 = scmp.lt.s32.totalorder %s138_s12, %s138_s12 }
  0x2a   :  { %167 = vmatpush3.bf16.msra.mxu0 %v166_v5  ;;  %p224_p2 = scmp.ne.s32.totalorder %s138_s12, %s223_s13  ;;  %p229_p4 = scmp.lt.s32.totalorder %s223_s13, %s223_s13 }
  0x2b   :  { %168 = vmatprep.subr.bf16.mxu0 %v255_v0 }
  0x2c   :  { %p230_p5 = por %p229_p4, %p228_p3 }
  0x2e   :  { %170 = vmatpush3.bf16.msra.mxu0 %v169_v7  ;;  %p231_p6 = pnand %p230_p5, %p224_p2 }
  0x31   :  { %163 = vmatmul.mubr.msk.f32.vlgmr.msra.gmra.mrb[0].mxu0 %vm53_vm1, %v41_v8 }
 0x104   :  { %v123_v10 = vpop.f32.mrb[0].mxu0 }
 0x105   :  { %v124_v11 = vadd.f32 %v147_v9, %v123_v10  ;;  %v164_v12 = vpop.f32.mrb[1].mxu0 }
 0x107   :  { %v127_v13 = vmul.f32 0.2, %v124_v11 }
 0x109   :  { %v128_v14 = vmax.f32 %v124_v11, %v127_v13 }
 0x10b   :  { %130 = vst.msk [vmem:[#allocation7] sm:$0xff] %vm129_vm2, %v128_v14 }
 0x10c   :  { %234 = shalt.err (!%p231_p6)
}
 0x10d   :  { %s235_s2 = scalar_lea.hbm %s328_s3, 128 }
 0x10e   :  { %p236_p7 = scmp.ne.s32.totalorder %s328_s3, %s235_s2  ;;  %p239_p8 = scmp.lt.u32.totalorder %s235_s2, %s328_s3 }
 0x110   :  { %p241_p9 = pnand %p239_p8, %p236_p7 }
 0x112   :  { %244 = shalt.err (!%p241_p9)
}
 0x113   :  { %140 = dma.vmem_to_hbm [thread:$0]  %s138_s12, 128, %s328_s3, [#allocation4]  }
 0x114   :  { %249 = dma.done.wait [#allocation4], 128  }
 0x115   :  { %250 = vsyncadd [#allocation4], 4294967168 }
 0x116   :  { %144 = vsyncpa [#allocation3], 1 }
 0x117   :  { %145 = vsyncpa [#allocation6], 1 }
 0x118   :  { %146 = vsyncpa [#allocation4], 1 }

</bundles_post_ra>
